<compile_context>
chip_gen: v5e
topology: v5e:2x2
jax: 0.10.0
libtpu: 0.0.40
codegen_flags: <defaults>
</compile_context>

<pallas_src>
import jax
import jax.numpy as jnp
from jax.experimental import pallas as pl
from jax.experimental.pallas import tpu as pltpu

NO_DIV_BY_ZERO = 1e-9


def _snake_kernel(x_ref, a_ref, inv_ref, o_ref):
    # x_ref:   (1, CT, LT)  activation tile
    # a_ref:   (CT, 1)      effective alpha (exp already applied in wrapper if logscale)
    # inv_ref: (CT, 1)      1 / (alpha_eff + eps), precomputed in wrapper
    # o_ref:   (1, CT, LT)
    x = x_ref[0].astype(jnp.float32)            # (CT, LT) f32 compute
    a = a_ref[...]                              # (CT, 1)  f32
    inv = inv_ref[...]                          # (CT, 1)  f32
    s = jnp.sin(x * a)                          # VPU polynomial sine (exact vs. reference)
    o_ref[0] = (x + (s * s) * inv).astype(o_ref.dtype)


def _sublane_unit(dtype):
    # Rows per vreg: 8 for 32-bit, 16 for 16-bit, 32 for 8-bit dtypes.
    return max(8, 32 // jnp.dtype(dtype).itemsize)


def _select_tiles(C, T, dtype, block_budget_bytes, c_tile_cap):
    itemsize = jnp.dtype(dtype).itemsize
    unit = _sublane_unit(dtype)

    # Channel tile: full extent when it fits the cap (always layout-legal);
    # otherwise a sublane-aligned tile — ragged edge handled by the cdiv grid.
    if C <= c_tile_cap:
        ct = C
    else:
        ct = max(unit, (c_tile_cap // unit) * unit)

    # Time tile: lane-dense multiple of 128 sized against the block byte budget
    # so low-channel layers get long tiles (per-step overhead amortized) and
    # high-channel layers stay within VMEM.
    lanes = (block_budget_bytes // max(1, ct * itemsize) // 128) * 128
    lt = max(128, lanes)
    if lt >= T:
        lt = T          # single full-extent block along time (legal for any T)
    return ct, lt


def snake_forward(x, alpha, alpha_logscale=False, *,
                  block_budget_bytes=2 * 1024 * 1024, c_tile_cap=512):
    """Snake.forward for x of shape (N, C, T) and alpha of shape (C,)."""
    N, C, T = x.shape

    # Hoist per-channel math out of the kernel (computed once, O(C)).
    a_eff = alpha.astype(jnp.float32)
    if alpha_logscale:
        a_eff = jnp.exp(a_eff)
    inv = 1.0 / (a_eff + NO_DIV_BY_ZERO)
    a_eff = a_eff.reshape(C, 1)
    inv = inv.reshape(C, 1)

    ct, lt = _select_tiles(C, T, x.dtype, block_budget_bytes, c_tile_cap)
    grid = (N, pl.cdiv(C, ct), pl.cdiv(T, lt))

    return pl.pallas_call(
        _snake_kernel,
        out_shape=jax.ShapeDtypeStruct((N, C, T), x.dtype),
        grid_spec=pltpu.PrefetchScalarGridSpec(
            num_scalar_prefetch=0,
            grid=grid,
            in_specs=[
                pl.BlockSpec((1, ct, lt), lambda n, c, t: (n, c, t)),
                # alpha / inv ignore the batch & time grid axes -> stay VMEM-resident
                # across the (innermost) time loop instead of being re-DMA'd per tile.
                pl.BlockSpec((ct, 1), lambda n, c, t: (c, 0)),
                pl.BlockSpec((ct, 1), lambda n, c, t: (c, 0)),
            ],
            out_specs=pl.BlockSpec((1, ct, lt), lambda n, c, t: (n, c, t)),
        ),
        compiler_params=pltpu.CompilerParams(
            # All axes independent -> megacore sharding across TensorCores (v7x).
            dimension_semantics=("parallel", "parallel", "parallel"),
            vmem_limit_bytes=32 * 1024 * 1024,
        ),
    )(x, a_eff, inv)


def _reference_forward(x, alpha, alpha_logscale=False):
    """Pure-JAX mirror of the PyTorch Snake.forward for verification."""
    a = alpha.reshape(1, -1, 1).astype(jnp.float32)
    if alpha_logscale:
        a = jnp.exp(a)
    xf = x.astype(jnp.float32)
    y = xf + 1.0 / (a + NO_DIV_BY_ZERO) * jnp.sin(xf * a) ** 2
    return y.astype(x.dtype)


if __name__ == "__main__":
    key = jax.random.PRNGKey(0)
    kx1, ka1, kx2, ka2, kx3, ka3, kx4, ka4 = jax.random.split(key, 8)

    # --- Test 1: small, unaligned shapes (module-style: B=2, C=4, T=16) ------
    N, C, T = 2, 4, 16
    x1 = jax.random.normal(kx1, (N, C, T), dtype=jnp.float32)
    a1 = 1.0 + 0.5 * jax.random.normal(ka1, (C,), dtype=jnp.float32)
    out1 = jax.block_until_ready(snake_forward(x1, a1, alpha_logscale=False))
    ref1 = _reference_forward(x1, a1, alpha_logscale=False)
    assert out1.shape == (N, C, T)
    assert jnp.allclose(out1, ref1, atol=1e-5, rtol=1e-5), "Snake mismatch (linear alpha)"

    # --- Test 2: aligned shapes + alpha_logscale ------------------------------
    N2, C2, T2 = 2, 16, 256
    x2 = jax.random.normal(kx2, (N2, C2, T2), dtype=jnp.float32)
    a2 = 0.1 * jax.random.normal(ka2, (C2,), dtype=jnp.float32)
    out2 = jax.block_until_ready(snake_forward(x2, a2, alpha_logscale=True))
    ref2 = _reference_forward(x2, a2, alpha_logscale=True)
    assert jnp.allclose(out2, ref2, atol=1e-5, rtol=1e-5), "Snake mismatch (logscale alpha)"

    # --- Test 3: ragged C and T exercising the cdiv-grid masked-edge path -----
    # (small block budget / channel cap forces multiple tiles with ragged edges)
    N3, C3, T3 = 1, 20, 1000
    x3 = jax.random.normal(kx3, (N3, C3, T3), dtype=jnp.float32)
    a3 = 1.0 + 0.25 * jax.random.normal(ka3, (C3,), dtype=jnp.float32)
    out3 = jax.block_until_ready(
        snake_forward(x3, a3, alpha_logscale=False,
                      block_budget_bytes=16 * 1024, c_tile_cap=8))
    ref3 = _reference_forward(x3, a3, alpha_logscale=False)
    assert jnp.allclose(out3, ref3, atol=1e-5, rtol=1e-5), "Snake mismatch (ragged tiles)"

    # --- Test 4: bf16 activations (dtype-aware sublane unit, f32 math inside) -
    N4, C4, T4 = 2, 16, 256
    x4 = jax.random.normal(kx4, (N4, C4, T4), dtype=jnp.float32).astype(jnp.bfloat16)
    a4 = 1.0 + 0.25 * jax.random.normal(ka4, (C4,), dtype=jnp.float32)
    out4 = jax.block_until_ready(snake_forward(x4, a4, alpha_logscale=False))
    ref4 = _reference_forward(x4, a4, alpha_logscale=False)
    assert out4.dtype == jnp.bfloat16
    assert jnp.allclose(out4.astype(jnp.float32), ref4.astype(jnp.float32),
                        atol=1e-2, rtol=1e-2), "Snake mismatch (bf16)"

    print("KERNEL_OK")
</pallas_src>

<mosaic_0001>
module attributes {stable_mosaic.version = 11 : i64} {
  func.func @_snake_kernel(%arg0: i32, %arg1: i32, %arg2: i32, %arg3: memref<1x4x16xf32, #tpu.memory_space<vmem>>, %arg4: memref<4x1xf32, #tpu.memory_space<vmem>>, %arg5: memref<4x1xf32, #tpu.memory_space<vmem>>, %arg6: memref<1x4x16xf32, #tpu.memory_space<vmem>>) attributes {dimension_semantics = [#tpu.dimension_semantics<parallel>, #tpu.dimension_semantics<parallel>, #tpu.dimension_semantics<parallel>], iteration_bounds = array<i64: 2, 1, 1>, scalar_prefetch = 0 : i64, scratch_operands = 0 : i64, tpu.core_type = #tpu.core_type<tc>, window_params = [{transform_indices = @transform_0, window_bounds = array<i64: 1, 4, 16>}, {transform_indices = @transform_1, window_bounds = array<i64: 4, 1>}, {transform_indices = @transform_2, window_bounds = array<i64: 4, 1>}, {transform_indices = @transform_3, window_bounds = array<i64: 1, 4, 16>}]} {
    %c0 = arith.constant 0 : index
    %c0_0 = arith.constant 0 : index
    %c0_1 = arith.constant 0 : index
    %0 = vector.load %arg3[%c0, %c0_0, %c0_1] : memref<1x4x16xf32, #tpu.memory_space<vmem>>, vector<1x4x16xf32>
    %1 = vector.shape_cast %0 : vector<1x4x16xf32> to vector<4x16xf32>
    %c0_2 = arith.constant 0 : index
    %c0_3 = arith.constant 0 : index
    %2 = vector.load %arg4[%c0_2, %c0_3] : memref<4x1xf32, #tpu.memory_space<vmem>>, vector<4x1xf32>
    %c0_4 = arith.constant 0 : index
    %c0_5 = arith.constant 0 : index
    %3 = vector.load %arg5[%c0_4, %c0_5] : memref<4x1xf32, #tpu.memory_space<vmem>>, vector<4x1xf32>
    %4 = vector.broadcast %2 : vector<4x1xf32> to vector<4x16xf32>
    %5 = arith.mulf %1, %4 : vector<4x16xf32>
    %6 = math.sin %5 : vector<4x16xf32>
    %7 = arith.mulf %6, %6 : vector<4x16xf32>
    %8 = vector.broadcast %3 : vector<4x1xf32> to vector<4x16xf32>
    %9 = arith.mulf %7, %8 : vector<4x16xf32>
    %10 = arith.addf %1, %9 : vector<4x16xf32>
    %c0_6 = arith.constant 0 : index
    %c0_7 = arith.constant 0 : index
    %c0_8 = arith.constant 0 : index
    %11 = vector.load %arg6[%c0_6, %c0_7, %c0_8] : memref<1x4x16xf32, #tpu.memory_space<vmem>>, vector<1x4x16xf32>
    %12 = vector.shape_cast %11 : vector<1x4x16xf32> to vector<4x16xf32>
    %13 = vector.shape_cast %10 : vector<4x16xf32> to vector<1x4x16xf32>
    tpu.vector_store %arg6[%c0_6, %c0_7, %c0_8], %13 {strides = array<i32>} : memref<1x4x16xf32, #tpu.memory_space<vmem>>, vector<1x4x16xf32>,
    return
  }
  func.func @transform_0(%arg0: i32, %arg1: i32, %arg2: i32) -> (i32, i32, i32) {
    %c0_i32 = arith.constant 0 : i32
    return %arg0, %arg1, %arg2 : i32, i32, i32
  }
  func.func @transform_1(%arg0: i32, %arg1: i32, %arg2: i32) -> (i32, i32) {
    %c0_i32 = arith.constant 0 : i32
    %c0_i32_0 = arith.constant 0 : i32
    return %arg1, %c0_i32 : i32, i32
  }
  func.func @transform_2(%arg0: i32, %arg1: i32, %arg2: i32) -> (i32, i32) {
    %c0_i32 = arith.constant 0 : i32
    %c0_i32_0 = arith.constant 0 : i32
    return %arg1, %c0_i32 : i32, i32
  }
  func.func @transform_3(%arg0: i32, %arg1: i32, %arg2: i32) -> (i32, i32, i32) {
    %c0_i32 = arith.constant 0 : i32
    return %arg0, %arg1, %arg2 : i32, i32, i32
  }
}

</mosaic_0001>

<bundles_post_ra>
// kernel: tpu_custom_call.1
= control target key start
LH: loop header
LB: loop body
LE: loop exit
PB: predicated region body
PF: predicated region fallthrough
CT: control target
= control target key end

     0   :  { %8 = vsyncpa [#allocation3], 0  ;;  %s899_s0 = inlined_call_operand.vmem [shape: f32[2,4,16], index: 0, kind: input, shape index: {}]   ;;  %s900_s1 = inlined_call_operand.vmem [shape: f32[4,1], index: 1, kind: input, shape index: {}]   ;;  %s901_s2 = inlined_call_operand.vmem [shape: f32[4,1], index: 2, kind: input, shape index: {}]   ;;  %s902_s3 = inlined_call_operand.hbm [shape: f32[2,4,16], index: 3, kind: output, shape index: {}]  }
   0x1   :  { %10 = vsyncpa [#allocation3 + $0x1], 0  ;;  %s731_s12 = smov 0   ;;  %s733_s13 = smov 0  }
   0x2   :  { %s735_s14 = smov 0   ;;  %s737_s15 = smov 0  }
   0x3   :  { %s739_s16 = smov 0   ;;  %s741_s17 = smov 0  }
   0x4 LB: > { %s545_s18 = sadd.s32 4294967295, %s702_s17   ;;  %s546_s19 = sadd.s32 4294967294, %s702_s17   ;;  %s702_s17 = sphi %s741_s17, %s16_s17   ;;  %s698_s16 = sphi %s739_s16, %s909_s16   ;;  %s694_s15 = sphi %s737_s15, %s908_s15   ;;  %s690_s14 = sphi %s735_s14, %s907_s14   ;;  %s686_s13 = sphi %s733_s13, %s906_s13   ;;  %s682_s12 = sphi %s731_s12, %s905_s12  }
   0x5   : > { %s35_s20 = sadd.s32 1, %s698_s16  ;;  %s128_s21 = sadd.s32 1, %s690_s14 }
   0x6   : > { %p37_p0 = scmp.ge.s32.totalorder %s35_s20, 2  ;;  %p138_p1 = scmp.ne.s32.totalorder %s690_s14, %s686_s13 }
   0x7   : > { %p139_p2 = scmp.eq.s32.totalorder %s545_s18, 1  ;;  %p144_p3 = scmp.ne.s32.totalorder %s686_s13, %s682_s12 }
   0x8   : > { %s911_s20 = smov (%p37_p0, %s35_s20), 0  ;;  %p145_p5 = scmp.eq.s32.totalorder %s546_s19, 1 }
   0x9   : > { %p771_p4 = por %p139_p2, %p138_p1  ;;  %s121_s23 = ssub.s32 %s698_s16, %s911_s20 }
   0xa   : > { %p551_p6 = scmp.ge.s32.totalorder %s702_s17, 1  ;;  %p126_p7 = scmp.eq.s32.totalorder %s121_s23, 0 }
   0xb   : > { %p778_p8 = por %p145_p5, %p144_p3  ;;  %p190_p9 = scmp.lt.s32.totalorder %s702_s17, 3 }
   0xc   : > { %s784_s25 = scalar_select %p126_p7, %s690_s14, %s128_s21  }
   0xd   : > { %p191_p10 = pnand %p551_p6, %p190_p9 }
   0xe   : > { %p227_p11 = scmp.lt.s32.totalorder (!%p191_p10), %s694_s15, 1  ;;  %s224_s8 = sand.u32 (!%p191_p10), 1, %s686_s13  }
   0xf   : > { %194 = sbr.rel (%p191_p10) target bundleno = 244 (0xf4), region = 32  ;;  %s552_s9 = sshll.u32 (!%p191_p10), %s224_s8, 2 }
  0x10   : > { %s558_s10 = sshll.u32 (!%p191_p10), %s694_s15, 2  ;;  %s226_s21 = scalar_lea.vmem (!%p191_p10), [#allocation2], %s552_s9 }
  0x11   : > { %s432_s19 = scalar_lea.hbm (!%p191_p10), %s902_s3, %s558_s10  ;;  %s434_s23 = sshll.u32 (!%p191_p10), %s226_s21, 4  ;;  %s435_s23 = int_to_ptr.vmem [resolvable:$true] %s434_s23 }
  0x12   : > { %s436_s26 = sshll.u32 (!%p191_p10), %s432_s19, 4  ;;  %s437_s26 = int_to_ptr.hbm [resolvable:$true] %s436_s26 }
  0x13   : > { %s638_s27 = sshra.s32 (!%p191_p10), %s437_s26, 4  ;;  %s639_s27 = int_to_ptr.hbm [resolvable:$true] %s638_s27 }
  0x14   : > { %v246_v0 = vld [vmem:[%s900_s1] sm:$0xf]  ;;  %v704_v1 = vmov 0   ;;  %s228_s30 = scalar_select %p227_p11, %s694_s15, 1  ;;  %v705_v17 = vmov 683565275  }
  0x15   : > { %623 = vset.pattern.permute.xlu0 %v704_v1  ;;  %v247_v2 = vld [vmem:[%s901_s2] sm:$0xf]  ;;  %v706_v19 = vmov 2475754826   ;;  %v707_v22 = vmov 2131351028   ;;  %p645_p1 = scmp.lt.s32.totalorder %s639_s27, %s902_s3 }
  0x16   : > { %250 = vperm.xlu0 %623, %v246_v0   ;;  %s553_s4 = sshll.u32 %s228_s30, 2  ;;  %v708_v25 = vmov 2102212464   ;;  %v709_v28 = vmov 920167782   ;;  %s420_s15 = scalar_lea.sflag [#allocation3], %s224_s8 }
  0x17   : > { %s236_s7 = scalar_lea.vmem %s899_s0, %s553_s4  ;;  %v710_v31 = vmov 1326507024   ;;  %s640_s28 = scalar_lea.hbm %s639_s27, 4 }
  0x18   : > { %v798_v3 = vld [vmem:[%s236_s7] sm:$0xf]  ;;  %p641_p12 = scmp.ne.s32.totalorder %s639_s27, %s640_s28  ;;  %s644_s4 = scalar_lea.hbm %s902_s3, 8 }
  0x19   : > { %p646_p2 = scmp.lt.s32.totalorder %s644_s4, %s640_s28 }
  0x1a   : > { %p642_p13 = pnand %p641_p12, %p771_p4 }
  0x1b   : > { %p647_p3 = por %p646_p2, %p645_p1 }
  0x1c   : > { %p643_p0 = pneg %p642_p13 }
  0x1e   : > { %412 = vperm.xlu0 %623, %v247_v2   ;;  %p648_p5 = pnand %p647_p3, %p643_p0 }
  0x88   : > { %v251_v4 = vpop.permute.xlu0 %250 }
  0x89   : > { %v801_v5 = vmul.f32 %v251_v4, %v798_v3 }
  0x8b   : > { %v257_v6 = vand.u32 2139095040, %v801_v5  ;;  %v254_v9 = vand.u32 2147483647, %v801_v5  ;;  %vm256_vm12 = vcmp.lt.s32.totalorder %v801_v5, 0 }
  0x8d   : > { %v258_v7 = vshrl.u32 %v257_v6, 23  ;;  %v261_v11 = vand.u32 8388607, %v254_v9  ;;  %vm255_vm13 = vcmp.le.f32.partialorder %v254_v9, 0.7853982 }
  0x8f   : > { %v554_v8 = vadd.s32 4294967169, %v258_v7  ;;  %v262_v15 = vor.u32 8388608, %v261_v11 }
  0x91   : > { %v264_v10 = vadd.s32 1, %v554_v8  ;;  %v818_v38 = vshll.u32 %v262_v15, 8 }
  0x93   : > { %vm265_vm0 = vcmp.gt.s32.totalorder %v264_v10, 0  ;;  %v303_v47 = vand.u32 65535, %v818_v38  ;;  %v304_v52 = vshrl.u32 %v818_v38, 16 }
  0x94   : > { %v266_v12 = vsel %vm265_vm0, %v264_v10, 0 }
  0x95   : > { %v268_v13 = vand.u32 31, %v266_v12  ;;  %v809_v16 = vshrl.u32 %v266_v12, 5 }
  0x97   : > { %v807_v14 = vsub.s32 32, %v268_v13  ;;  %v271_v18 = vshll.u32 %v705_v17, %v268_v13  ;;  %v274_v20 = vshll.u32 %v706_v19, %v268_v13  ;;  %v277_v24 = vshll.u32 %v707_v22, %v268_v13 }
  0x98   : > { %v280_v27 = vshll.u32 %v708_v25, %v268_v13  ;;  %v283_v30 = vshll.u32 %v709_v28, %v268_v13  ;;  %vm286_vm1 = vcmp.lt.s32.totalorder %v809_v16, 1  ;;  %vm289_vm2 = vcmp.lt.s32.totalorder %v809_v16, 4 }
  0x99   : > { %v272_v21 = vshrl.u32 %v706_v19, %v807_v14  ;;  %v275_v23 = vshrl.u32 %v707_v22, %v807_v14  ;;  %v278_v26 = vshrl.u32 %v708_v25, %v807_v14  ;;  %v281_v29 = vshrl.u32 %v709_v28, %v807_v14 }
  0x9a   : > { %v284_v32 = vshrl.u32 %v710_v31, %v807_v14  ;;  %vm288_vm3 = vcmp.lt.s32.totalorder %v809_v16, 3  ;;  %vm287_vm4 = vcmp.lt.s32.totalorder %v809_v16, 2  ;;  %v270_v12 = vshrl.u32 %v705_v17, %v807_v14 }
  0x9b   : > { %v273_v33 = vor.u32 %v272_v21, %v271_v18  ;;  %v276_v34 = vor.u32 %v275_v23, %v274_v20  ;;  %v279_v35 = vor.u32 %v278_v26, %v277_v24  ;;  %v282_v36 = vor.u32 %v281_v29, %v280_v27 }
  0x9c   : > { %v285_v37 = vor.u32 %v284_v32, %v283_v30 }
  0x9d   : > { %v294_v39 = vsel %vm286_vm1, %v273_v33, %v276_v34  ;;  %v298_v40 = vsel %vm286_vm1, %v276_v34, %v279_v35  ;;  %v295_v41 = vsel %vm289_vm2, %v282_v36, 920167782  ;;  %v291_v6 = vsel %vm289_vm2, %v279_v35, 2102212464 }
  0x9e   : > { %v299_v42 = vsel %vm289_vm2, %v285_v37, 1326507024  ;;  %v296_v43 = vsel %vm288_vm3, %v279_v35, %v295_v41  ;;  %v290_v22 = vsel %vm286_vm1, %v270_v12, %v273_v33  ;;  %v292_v23 = vsel %vm288_vm3, %v276_v34, %v291_v6 }
  0x9f   : > { %v300_v44 = vsel %vm288_vm3, %v282_v36, %v299_v42  ;;  %v297_v45 = vsel %vm287_vm4, %v294_v39, %v296_v43  ;;  %v293_v14 = vsel %vm287_vm4, %v290_v22, %v292_v23  ;;  %vm397_vm1 = vweird.f32 %v801_v5 }
  0xa0   : > { %v301_v46 = vsel %vm287_vm4, %v298_v40, %v300_v44  ;;  %v327_v50 = vand.u32 65535, %v297_v45  ;;  %v328_v51 = vshrl.u32 %v297_v45, 16  ;;  %v347_v30 = vmul.u32 %v818_v38, %v293_v14 }
  0xa1   : > { %v305_v48 = vand.u32 65535, %v301_v46  ;;  %v306_v49 = vshrl.u32 %v301_v46, 16  ;;  %vm417_vm2 = vcmask 125952  }
  0xa2   : > { %v330_v54 = vmul.u32 %v328_v51, %v303_v47  ;;  %v331_v56 = vmul.u32 %v327_v50, %v304_v52  ;;  %v329_v59 = vmul.u32 %v327_v50, %v303_v47  ;;  %v332_v62 = vmul.u32 %v328_v51, %v304_v52 }
  0xa3   : > { %v308_v53 = vmul.u32 %v306_v49, %v303_v47  ;;  %v309_v55 = vmul.u32 %v305_v48, %v304_v52  ;;  %v307_v57 = vmul.u32 %v305_v48, %v303_v47  ;;  %v310_v61 = vmul.u32 %v306_v49, %v304_v52 }
  0xa4   : > { %v333_v60 = vshll.u32 %v330_v54, 16  ;;  %v335_v0 = vshll.u32 %v331_v56, 16  ;;  %v334_v20 = vshrl.u32 %v330_v54, 16  ;;  %v336_v26 = vshrl.u32 %v331_v56, 16 }
  0xa5   : > { %v311_v58 = vshll.u32 %v308_v53, 16  ;;  %v313_v63 = vshll.u32 %v309_v55, 16  ;;  %v312_v18 = vshrl.u32 %v308_v53, 16  ;;  %v314_v24 = vshrl.u32 %v309_v55, 16 }
  0xa6   : > { %vm337_vm6 = vc.u32 %v329_v59, %v333_v60  ;;  %v339_v4 = vadd.s32 %v333_v60, %v329_v59 }
  0xa7   : > { %vm315_vm5 = vc.u32 %v307_v57, %v311_v58  ;;  %v317_v2 = vadd.s32 %v311_v58, %v307_v57  ;;  %v338_v8 = vsel %vm337_vm6, 1, %v704_v1 }
  0xa8   : > { %v316_v7 = vsel %vm315_vm5, 1, %v704_v1  ;;  %v340_v11 = vadd.s32 %v338_v8, %v332_v62  ;;  %vm341_vm8 = vc.u32 %v339_v4, %v335_v0  ;;  %v343_v28 = vadd.s32 %v339_v4, %v335_v0 }
  0xa9   : > { %v318_v10 = vadd.s32 %v316_v7, %v310_v61  ;;  %vm319_vm7 = vc.u32 %v317_v2, %v313_v63  ;;  %v342_v15 = vsel %vm341_vm8, 1, %v704_v1 }
  0xaa   : > { %v320_v13 = vsel %vm319_vm7, 1, %v704_v1  ;;  %v344_v21 = vadd.s32 %v342_v15, %v340_v11 }
  0xab   : > { %v322_v19 = vadd.s32 %v320_v13, %v318_v10 }
  0xac   : > { %v345_v27 = vadd.s32 %v344_v21, %v334_v20 }
  0xad   : > { %v323_v25 = vadd.s32 %v322_v19, %v312_v18 }
  0xae   : > { %v346_v1 = vadd.s32 %v345_v27, %v336_v26 }
  0xaf   : > { %v324_v17 = vadd.s32 %v323_v25, %v314_v24  ;;  %v413_v24 = vpop.permute.xlu0 %412 }
  0xb0   : > { %v350_v29 = vadd.s32 1, %v346_v1 }
  0xb1   : > { %vm349_vm9 = vc.u32 %v324_v17, %v343_v28  ;;  %v348_v42 = vadd.s32 %v343_v28, %v324_v17 }
  0xb2   : > { %v351_v31 = vsel %vm349_vm9, %v350_v29, %v346_v1 }
  0xb3   : > { %v352_v32 = vadd.s32 %v351_v31, %v347_v30 }
  0xb5   : > { %v353_v33 = vadd.s32 536870912, %v352_v32 }
  0xb7   : > { %v354_v35 = vshrl.u32 %v353_v33, 30 }
  0xb9   : > { %v355_v36 = vshll.u32 %v354_v35, 30  ;;  %v378_v55 = vsub.s32 4, %v354_v35 }
  0xbb   : > { %v356_v34 = vsub.s32 %v352_v32, %v355_v36  ;;  %v379_v60 = vsel %vm256_vm12, %v378_v55, %v354_v35 }
  0xbc   : > { %v381_v63 = vsel %vm255_vm13, 0, %v379_v60 }
  0xbd   : > { %vm357_vm10 = vcmp.lt.s32.totalorder %v356_v34, 0  ;;  %v358_v37 = vsub.s32 0, %v356_v34  ;;  %v398_v7 = vadd.s32 3, %v381_v63 }
  0xbf   : > { %v359_v39 = vsel %vm357_vm10, %v358_v37, %v356_v34  ;;  %v399_v12 = vand.u32 3, %v398_v7 }
  0xc0   : > { %v360_v40 = vclz %v359_v39 }
  0xc1   : > { %vm401_vm14 = vcmp.eq.s32.totalorder %v399_v12, 0  ;;  %vm404_vm15 = vcmp.eq.s32.totalorder %v399_v12, 2  ;;  %vm400_vm0 = vcmp.lt.s32.totalorder %v399_v12, 2 }
  0xc2   : > { %v555_v41 = vadd.s32 4294967294, %v360_v40 }
  0xc4   : > { %vm556_vm11 = vcmp.lt.s32.totalorder %v555_v41, 0 }
  0xc5   : > { %v363_v16 = vsel %vm556_vm11, 0, %v555_v41 }
  0xc6   : > { %v364_v43 = vsub.s32 32, %v363_v16  ;;  %v368_v44 = vsub.s32 4294967266, %v363_v16  ;;  %v365_v45 = vshll.u32 %v356_v34, %v363_v16 }
  0xc8   : > { %v366_v46 = vshrl.u32 %v348_v42, %v364_v43  ;;  %v369_v47 = vadd.s32 127, %v368_v44 }
  0xca   : > { %v367_v38 = vor.u32 %v366_v46, %v365_v45  ;;  %v370_v48 = vshll.u32 %v369_v47, 23 }
  0xcc   : > { %v371_v49 = vor.u32 4788187, %v370_v48  ;;  %v374_v51 = vcvt.s32.f32 %v367_v38 }
  0xce   : > { %v372_v50 = vand.u32 2147483647, %v371_v49 }
  0xd0   : > { %v375_v52 = vmul.f32 %v374_v51, %v372_v50 }
  0xd2   : > { %v376_v53 = vxor.u32 2147483648, %v375_v52 }
  0xd4   : > { %v377_v54 = vsel %vm256_vm12, %v376_v53, %v375_v52 }
  0xd5   : > { %v380_v56 = vsel %vm255_vm13, %v801_v5, %v377_v54 }
  0xd6   : > { %v382_v57 = vmul.f32 %v380_v56, %v380_v56 }
  0xd8   : > { %v383_v58 = vmul.f32 -0.001358992, %v382_v57  ;;  %v390_v59 = vmul.f32 -0.00019511016, %v382_v57 }
  0xda   : > { %v384_v61 = vadd.f32 0.041655596, %v383_v58  ;;  %v391_v62 = vadd.f32 0.008332121, %v390_v59 }
  0xdc   : > { %v385_v0 = vmul.f32 %v384_v61, %v382_v57  ;;  %v392_v2 = vmul.f32 %v391_v62, %v382_v57 }
  0xde   : > { %v386_v4 = vadd.f32 -0.4999988, %v385_v0  ;;  %v393_v6 = vadd.f32 -0.16666654, %v392_v2 }
  0xe0   : > { %v387_v8 = vmul.f32 %v386_v4, %v382_v57  ;;  %v394_v9 = vmul.f32 %v393_v6, %v382_v57 }
  0xe2   : > { %v388_v10 = vadd.f32 1.0, %v387_v8  ;;  %v395_v11 = vadd.f32 1.0, %v394_v9 }
  0xe4   : > { %v396_v13 = vmul.f32 %v395_v11, %v380_v56  ;;  %v405_v15 = vxor.u32 2147483648, %v388_v10 }
  0xe6   : > { %v402_v18 = vxor.u32 2147483648, %v396_v13  ;;  %v406_v20 = vsel %vm404_vm15, %v405_v15, %v396_v13 }
  0xe8   : > { %v403_v19 = vsel %vm401_vm14, %v388_v10, %v402_v18 }
  0xe9   : > { %v407_v21 = vsel %vm400_vm0, %v403_v19, %v406_v20 }
  0xea   : > { %v408_v22 = vsel %vm397_vm1, nan, %v407_v21 }
  0xeb   : > { %v409_v23 = vmul.f32 %v408_v22, %v408_v22 }
  0xed   : > { %v415_v25 = vmul.f32 %v413_v24, %v409_v23 }
  0xef   : > { %v416_v26 = vadd.f32 %v415_v25, %v798_v3 }
  0xf1   : > { %418 = vst.msk [vmem:[%s226_s21] sm:$0xf] %vm417_vm2, %v416_v26 }
  0xf2   : > { %651 = shalt.err (!%p648_p5)
}
  0xf3   : > { %561 = dma.vmem_to_hbm [thread:$0]  (%p771_p4), %s435_s23, 64, %s437_s26, %s420_s15  }
  0xf4 PF: > { %p567_p6 = scmp.ge.s32.totalorder %s702_s17, 2  ;;  %s448_s7 = sand.u32 1, %s682_s12  }
  0xf5   : > { %s449_s8 = scalar_lea.sflag [#allocation3], %s448_s7 }
  0xf6   : > { %p564_p7 = pnand %p567_p6, %p778_p8 }
  0xf8   : > { %p565_p9 = pneg %p564_p7 }
  0xfa   : > { %677 = dma.done.wait (%p565_p9), %s449_s8, 64  }
  0xfb   : > { %679 = vsyncadd (%p565_p9), %s449_s8, 4294967232  ;;  %s16_s17 = sadd.s32 1, %s702_s17   ;;  %s905_s12 = smov %s686_s13 }
  0xfc   : > { %p13_p10 = scmp.ge.s32.totalorder %s16_s17, 4   ;;  %s906_s13 = smov %s690_s14 }
  0xfd   : > { %s907_s14 = smov %s784_s25  ;;  %s908_s15 = smov %s698_s16 }
  0xfe   : > { %s909_s16 = smov %s911_s20  ;;  %15 = sbr.rel (!%p13_p10) target bundleno = 4 (0x4), region = 73 }
 0x103   :  { %455 = vsyncpa [#allocation3], 1 }
 0x104   :  { %457 = vsyncpa [#allocation3 + $0x1], 1 }

</bundles_post_ra>
